<compile_context>
chip_gen: v7x
topology: tpu7x:2x2x1
jax: 0.10.0
libtpu: 0.0.40
codegen_flags: <defaults>
</compile_context>

<pallas_src>
import functools

import jax
import jax.numpy as jnp
from jax.experimental import pallas as pl
from jax.experimental.pallas import tpu as pltpu


def _round_up(x, m):
    return ((x + m - 1) // m) * m


def _cdiv(a, b):
    return -(-a // b)


def mlp_kernel(z_ref, xi_ref,
               w1z_ref, w1x_ref, b1_ref,
               w2_ref, b2_ref,
               w3_ref, b3_ref,
               w4_ref, b4_ref,
               o_ref):
    z = z_ref[...]          # (1, TM)  lane-dense batch tile
    xi = xi_ref[...]        # (1, TM)

    # Layer 1: K=2 contraction as two VPU broadcast FMAs. (H,1)*(1,TM) -> (H,TM)
    h = jnp.tanh(w1z_ref[...] * z + w1x_ref[...] * xi + b1_ref[...])

    # Layers 2,3: MXU matmuls, batch on the lane axis (N=TM).  Operand dtype follows the
    # (pre-cast) weights: f32 or bf16; accumulation is always f32.
    h = jnp.tanh(jnp.dot(w2_ref[...], h.astype(w2_ref.dtype),
                         preferred_element_type=jnp.float32) + b2_ref[...])
    h = jnp.tanh(jnp.dot(w3_ref[...], h.astype(w3_ref.dtype),
                         preferred_element_type=jnp.float32) + b3_ref[...])

    # Layer 4 (out=1): (1,H)@(H,TM) on the MXU (large slack), lane-dense (1,TM) result.
    o_ref[...] = (jnp.dot(w4_ref[...], h, preferred_element_type=jnp.float32)
                  + b4_ref[...])


@functools.partial(jax.jit, static_argnames=("tm", "use_bf16_matmul"))
def pinn_forward(z, xi, params, *, tm=8192, use_bf16_matmul=True):
    """Forward pass of DampedOscillatorPINN.

    z, xi: (N, 1) float32.  Returns (N, 1) float32.
    params: dict with torch-layout weights/biases:
        w1 (H0,2), b1 (H0,1), w2 (H1,H0), b2 (H1,1),
        w3 (H2,H1), b3 (H2,1), w4 (1,H2),  b4 (1,1).
    """
    n = z.shape[0]
    n128 = _round_up(n, 128)

    # Batch tile: multiple of 128 lanes, no larger than the padded batch.
    tm_eff = max(128, min(int(tm), n128))
    tm_eff = _round_up(tm_eff, 128)
    # v7x has 2 TensorCores: keep >=2 grid steps whenever there is enough work so the
    # "parallel" grid axis can be sharded across both cores.
    if n128 > 256:
        tm_eff = min(tm_eff, _round_up(_cdiv(n128, 2), 128))
    n_pad = _round_up(n, tm_eff)
    grid = n_pad // tm_eff

    def to_row(v):
        v = v.reshape(-1).astype(jnp.float32)
        if n_pad != n:
            v = jnp.pad(v, (0, n_pad - n))
        return v.reshape(1, n_pad)

    z_row = to_row(z)
    xi_row = to_row(xi)

    w1, b1 = params["w1"], params["b1"]
    w2, b2 = params["w2"], params["b2"]
    w3, b3 = params["w3"], params["b3"]
    w4, b4 = params["w4"], params["b4"]
    w1z = w1[:, 0:1]        # (H0, 1) column multiplying z
    w1x = w1[:, 1:2]        # (H0, 1) column multiplying xi

    mm_dtype = jnp.bfloat16 if use_bf16_matmul else jnp.float32
    w2_mm = w2.astype(mm_dtype)
    w3_mm = w3.astype(mm_dtype)

    h0, h1, h2 = w1.shape[0], w2.shape[0], w3.shape[0]

    row_spec = pl.BlockSpec((1, tm_eff), lambda i: (0, i))

    def full_spec(a):
        # Whole (small) parameter array as one block; constant index across the grid.
        return pl.BlockSpec(a.shape, lambda i: (0, 0))

    grid_spec = pltpu.PrefetchScalarGridSpec(
        num_scalar_prefetch=0,
        grid=(grid,),
        in_specs=[
            row_spec, row_spec,
            full_spec(w1z), full_spec(w1x), full_spec(b1),
            full_spec(w2_mm), full_spec(b2),
            full_spec(w3_mm), full_spec(b3),
            full_spec(w4), full_spec(b4),
        ],
        out_specs=row_spec,
    )

    param_bytes = sum(int(p.size) * p.dtype.itemsize
                      for p in (w1z, w1x, b1, w2_mm, b2, w3_mm, b3, w4, b4))
    cost = pl.CostEstimate(
        flops=int(2 * (2 * h0 + h0 * h1 + h1 * h2 + h2) * n_pad),
        transcendentals=int((h0 + h1 + h2) * n_pad),
        bytes_accessed=int(3 * 4 * n_pad + param_bytes),
    )

    out_row = pl.pallas_call(
        mlp_kernel,
        out_shape=jax.ShapeDtypeStruct((1, n_pad), jnp.float32),
        grid_spec=grid_spec,
        cost_estimate=cost,
        compiler_params=pltpu.CompilerParams(
            dimension_semantics=("parallel",),
            vmem_limit_bytes=32 * 1024 * 1024),
    )(z_row, xi_row, w1z, w1x, b1, w2_mm, b2, w3_mm, b3, w4, b4)

    return out_row.reshape(-1)[:n].reshape(n, 1)


def init_params(key, hidden_layers=(64, 64, 64)):
    """Deterministic init matching torch.nn.Linear layer shapes / default init.

    torch.nn.Linear(in, out): weight (out, in) ~ U(-1/sqrt(in), 1/sqrt(in)), bias (out,)
    same distribution.  Stored here in torch (out, in) layout, biases as (out, 1) columns.
    """
    assert len(hidden_layers) == 3, "kernel is specialized for 3 hidden layers"
    dims = [2, *hidden_layers, 1]
    params = {}
    for li in range(len(dims) - 1):
        fan_in, fan_out = dims[li], dims[li + 1]
        key, kw, kb = jax.random.split(key, 3)
        bound = 1.0 / jnp.sqrt(jnp.float32(fan_in))
        params[f"w{li + 1}"] = jax.random.uniform(
            kw, (fan_out, fan_in), jnp.float32, -bound, bound)
        params[f"b{li + 1}"] = jax.random.uniform(
            kb, (fan_out, 1), jnp.float32, -bound, bound)
    return params


def pinn_forward_ref(z, xi, params):
    """Pure-JAX reference (mirrors the PyTorch forward), full-f32 matmul precision."""
    hi = jax.lax.Precision.HIGHEST
    x = jnp.concatenate([z, xi], axis=1)                                        # (N, 2)
    h = jnp.tanh(jnp.dot(x, params["w1"].T, precision=hi) + params["b1"].T)
    h = jnp.tanh(jnp.dot(h, params["w2"].T, precision=hi) + params["b2"].T)
    h = jnp.tanh(jnp.dot(h, params["w3"].T, precision=hi) + params["b3"].T)
    return jnp.dot(h, params["w4"].T, precision=hi) + params["b4"].T            # (N, 1)


# TODO(synk): compute_derivatives (autograd d/dz, d2/dz2) is not part of the forward hot
# path; obtain it with jax.grad / jax.jvp on pinn_forward (f32 fallback kept for that).

if __name__ == "__main__":
    key = jax.random.PRNGKey(0)
    kp, kz, kxi = jax.random.split(key, 3)

    params = init_params(kp, hidden_layers=(64, 64, 64))

    # Case 1: small non-tile-aligned batch (padding path, 2-step grid), f32 matmul path.
    n = 300
    z = jax.random.uniform(kz, (n, 1), jnp.float32, 0.0, 1.0)
    xi = jax.random.uniform(kxi, (n, 1), jnp.float32, 0.05, 0.5)
    out = jax.block_until_ready(pinn_forward(z, xi, params, use_bf16_matmul=False))
    ref = pinn_forward_ref(z, xi, params)
    assert out.shape == (n, 1)
    assert jnp.allclose(out, ref, atol=1e-3, rtol=1e-3), "mismatch vs reference (f32 path)"

    # Case 2: larger batch, multi-step grid, bf16 MXU-operand fast path.
    n2 = 3000
    k2a, k2b = jax.random.split(kz)
    z2 = jax.random.uniform(k2a, (n2, 1), jnp.float32, 0.0, 1.0)
    xi2 = jax.random.uniform(k2b, (n2, 1), jnp.float32, 0.05, 0.5)
    out2 = jax.block_until_ready(
        pinn_forward(z2, xi2, params, tm=1024, use_bf16_matmul=True))
    ref2 = pinn_forward_ref(z2, xi2, params)
    assert out2.shape == (n2, 1)
    assert jnp.allclose(out2, ref2, atol=1e-2, rtol=1e-2), "mismatch vs reference (bf16 path)"

    print("KERNEL_OK")
</pallas_src>

<mosaic_0001>
module attributes {stable_mosaic.version = 11 : i64} {
  func.func @mlp_kernel(%arg0: i32, %arg1: memref<1x256xf32, #tpu.memory_space<vmem>>, %arg2: memref<1x256xf32, #tpu.memory_space<vmem>>, %arg3: memref<64x1xf32, #tpu.memory_space<vmem>>, %arg4: memref<64x1xf32, #tpu.memory_space<vmem>>, %arg5: memref<64x1xf32, #tpu.memory_space<vmem>>, %arg6: memref<64x64xf32, #tpu.memory_space<vmem>>, %arg7: memref<64x1xf32, #tpu.memory_space<vmem>>, %arg8: memref<64x64xf32, #tpu.memory_space<vmem>>, %arg9: memref<64x1xf32, #tpu.memory_space<vmem>>, %arg10: memref<1x64xf32, #tpu.memory_space<vmem>>, %arg11: memref<1x1xf32, #tpu.memory_space<vmem>>, %arg12: memref<1x256xf32, #tpu.memory_space<vmem>>) attributes {dimension_semantics = [#tpu.dimension_semantics<parallel>], iteration_bounds = array<i64: 2>, scalar_prefetch = 0 : i64, scratch_operands = 0 : i64, tpu.core_type = #tpu.core_type<tc>, window_params = [{transform_indices = @transform_0, window_bounds = array<i64: 1, 256>}, {transform_indices = @transform_1, window_bounds = array<i64: 1, 256>}, {pipeline_mode = #tpu.pipeline_mode<synchronous>, transform_indices = @transform_2, window_bounds = array<i64: 64, 1>}, {pipeline_mode = #tpu.pipeline_mode<synchronous>, transform_indices = @transform_3, window_bounds = array<i64: 64, 1>}, {pipeline_mode = #tpu.pipeline_mode<synchronous>, transform_indices = @transform_4, window_bounds = array<i64: 64, 1>}, {pipeline_mode = #tpu.pipeline_mode<synchronous>, transform_indices = @transform_5, window_bounds = array<i64: 64, 64>}, {pipeline_mode = #tpu.pipeline_mode<synchronous>, transform_indices = @transform_6, window_bounds = array<i64: 64, 1>}, {pipeline_mode = #tpu.pipeline_mode<synchronous>, transform_indices = @transform_7, window_bounds = array<i64: 64, 64>}, {pipeline_mode = #tpu.pipeline_mode<synchronous>, transform_indices = @transform_8, window_bounds = array<i64: 64, 1>}, {pipeline_mode = #tpu.pipeline_mode<synchronous>, transform_indices = @transform_9, window_bounds = array<i64: 1, 64>}, {pipeline_mode = #tpu.pipeline_mode<synchronous>, transform_indices = @transform_10, window_bounds = array<i64: 1, 1>}, {transform_indices = @transform_11, window_bounds = array<i64: 1, 256>}]} {
    %c0 = arith.constant 0 : index
    %c0_0 = arith.constant 0 : index
    %0 = vector.load %arg1[%c0, %c0_0] : memref<1x256xf32, #tpu.memory_space<vmem>>, vector<1x256xf32>
    %c0_1 = arith.constant 0 : index
    %c0_2 = arith.constant 0 : index
    %1 = vector.load %arg2[%c0_1, %c0_2] : memref<1x256xf32, #tpu.memory_space<vmem>>, vector<1x256xf32>
    %c0_3 = arith.constant 0 : index
    %c0_4 = arith.constant 0 : index
    %2 = vector.load %arg3[%c0_3, %c0_4] : memref<64x1xf32, #tpu.memory_space<vmem>>, vector<64x1xf32>
    %3 = vector.broadcast %2 : vector<64x1xf32> to vector<64x256xf32>
    %4 = vector.broadcast %0 : vector<1x256xf32> to vector<64x256xf32>
    %5 = arith.mulf %3, %4 : vector<64x256xf32>
    %c0_5 = arith.constant 0 : index
    %c0_6 = arith.constant 0 : index
    %6 = vector.load %arg4[%c0_5, %c0_6] : memref<64x1xf32, #tpu.memory_space<vmem>>, vector<64x1xf32>
    %7 = vector.broadcast %6 : vector<64x1xf32> to vector<64x256xf32>
    %8 = vector.broadcast %1 : vector<1x256xf32> to vector<64x256xf32>
    %9 = arith.mulf %7, %8 : vector<64x256xf32>
    %10 = arith.addf %5, %9 : vector<64x256xf32>
    %c0_7 = arith.constant 0 : index
    %c0_8 = arith.constant 0 : index
    %11 = vector.load %arg5[%c0_7, %c0_8] : memref<64x1xf32, #tpu.memory_space<vmem>>, vector<64x1xf32>
    %12 = vector.broadcast %11 : vector<64x1xf32> to vector<64x256xf32>
    %13 = arith.addf %10, %12 : vector<64x256xf32>
    %14 = math.tanh %13 : vector<64x256xf32>
    %c0_9 = arith.constant 0 : index
    %c0_10 = arith.constant 0 : index
    %15 = vector.load %arg6[%c0_9, %c0_10] : memref<64x64xf32, #tpu.memory_space<vmem>>, vector<64x64xf32>
    %cst = arith.constant dense<0.000000e+00> : vector<64x256xf32>
    %16 = tpu.matmul %15, %14, %cst {dimension_numbers = #tpu.dot_dimension_numbers<[1], [0], [0], [1], [0, 0, 1, 1], [], []>} : vector<64x64xf32>, vector<64x256xf32>, vector<64x256xf32> -> vector<64x256xf32>
    %c0_11 = arith.constant 0 : index
    %c0_12 = arith.constant 0 : index
    %17 = vector.load %arg7[%c0_11, %c0_12] : memref<64x1xf32, #tpu.memory_space<vmem>>, vector<64x1xf32>
    %18 = vector.broadcast %17 : vector<64x1xf32> to vector<64x256xf32>
    %19 = arith.addf %16, %18 : vector<64x256xf32>
    %20 = math.tanh %19 : vector<64x256xf32>
    %c0_13 = arith.constant 0 : index
    %c0_14 = arith.constant 0 : index
    %21 = vector.load %arg8[%c0_13, %c0_14] : memref<64x64xf32, #tpu.memory_space<vmem>>, vector<64x64xf32>
    %cst_15 = arith.constant dense<0.000000e+00> : vector<64x256xf32>
    %22 = tpu.matmul %21, %20, %cst_15 {dimension_numbers = #tpu.dot_dimension_numbers<[1], [0], [0], [1], [0, 0, 1, 1], [], []>} : vector<64x64xf32>, vector<64x256xf32>, vector<64x256xf32> -> vector<64x256xf32>
    %c0_16 = arith.constant 0 : index
    %c0_17 = arith.constant 0 : index
    %23 = vector.load %arg9[%c0_16, %c0_17] : memref<64x1xf32, #tpu.memory_space<vmem>>, vector<64x1xf32>
    %24 = vector.broadcast %23 : vector<64x1xf32> to vector<64x256xf32>
    %25 = arith.addf %22, %24 : vector<64x256xf32>
    %26 = math.tanh %25 : vector<64x256xf32>
    %c0_18 = arith.constant 0 : index
    %c0_19 = arith.constant 0 : index
    %27 = vector.load %arg10[%c0_18, %c0_19] : memref<1x64xf32, #tpu.memory_space<vmem>>, vector<1x64xf32>
    %cst_20 = arith.constant dense<0.000000e+00> : vector<1x256xf32>
    %28 = tpu.matmul %27, %26, %cst_20 {dimension_numbers = #tpu.dot_dimension_numbers<[1], [0], [0], [1], [0, 0, 1, 1], [], []>} : vector<1x64xf32>, vector<64x256xf32>, vector<1x256xf32> -> vector<1x256xf32>
    %c0_21 = arith.constant 0 : index
    %c0_22 = arith.constant 0 : index
    %29 = vector.load %arg11[%c0_21, %c0_22] : memref<1x1xf32, #tpu.memory_space<vmem>>, vector<1x1xf32>
    %30 = vector.broadcast %29 : vector<1x1xf32> to vector<1x256xf32>
    %31 = arith.addf %28, %30 : vector<1x256xf32>
    %c0_23 = arith.constant 0 : index
    %c0_24 = arith.constant 0 : index
    %32 = vector.load %arg12[%c0_23, %c0_24] : memref<1x256xf32, #tpu.memory_space<vmem>>, vector<1x256xf32>
    tpu.vector_store %arg12[%c0_23, %c0_24], %31 {strides = array<i32>} : memref<1x256xf32, #tpu.memory_space<vmem>>, vector<1x256xf32>,
    return
  }
  func.func @transform_0(%arg0: i32) -> (i32, i32) {
    %c0_i32 = arith.constant 0 : i32
    %c0_i32_0 = arith.constant 0 : i32
    return %c0_i32, %arg0 : i32, i32
  }
  func.func @transform_1(%arg0: i32) -> (i32, i32) {
    %c0_i32 = arith.constant 0 : i32
    %c0_i32_0 = arith.constant 0 : i32
    return %c0_i32, %arg0 : i32, i32
  }
  func.func @transform_2(%arg0: i32) -> (i32, i32) {
    %c0_i32 = arith.constant 0 : i32
    %c0_i32_0 = arith.constant 0 : i32
    %c0_i32_1 = arith.constant 0 : i32
    return %c0_i32, %c0_i32_0 : i32, i32
  }
  func.func @transform_3(%arg0: i32) -> (i32, i32) {
    %c0_i32 = arith.constant 0 : i32
    %c0_i32_0 = arith.constant 0 : i32
    %c0_i32_1 = arith.constant 0 : i32
    return %c0_i32, %c0_i32_0 : i32, i32
  }
  func.func @transform_4(%arg0: i32) -> (i32, i32) {
    %c0_i32 = arith.constant 0 : i32
    %c0_i32_0 = arith.constant 0 : i32
    %c0_i32_1 = arith.constant 0 : i32
    return %c0_i32, %c0_i32_0 : i32, i32
  }
  func.func @transform_5(%arg0: i32) -> (i32, i32) {
    %c0_i32 = arith.constant 0 : i32
    %c0_i32_0 = arith.constant 0 : i32
    %c0_i32_1 = arith.constant 0 : i32
    return %c0_i32, %c0_i32_0 : i32, i32
  }
  func.func @transform_6(%arg0: i32) -> (i32, i32) {
    %c0_i32 = arith.constant 0 : i32
    %c0_i32_0 = arith.constant 0 : i32
    %c0_i32_1 = arith.constant 0 : i32
    return %c0_i32, %c0_i32_0 : i32, i32
  }
  func.func @transform_7(%arg0: i32) -> (i32, i32) {
    %c0_i32 = arith.constant 0 : i32
    %c0_i32_0 = arith.constant 0 : i32
    %c0_i32_1 = arith.constant 0 : i32
    return %c0_i32, %c0_i32_0 : i32, i32
  }
  func.func @transform_8(%arg0: i32) -> (i32, i32) {
    %c0_i32 = arith.constant 0 : i32
    %c0_i32_0 = arith.constant 0 : i32
    %c0_i32_1 = arith.constant 0 : i32
    return %c0_i32, %c0_i32_0 : i32, i32
  }
  func.func @transform_9(%arg0: i32) -> (i32, i32) {
    %c0_i32 = arith.constant 0 : i32
    %c0_i32_0 = arith.constant 0 : i32
    %c0_i32_1 = arith.constant 0 : i32
    return %c0_i32, %c0_i32_0 : i32, i32
  }
  func.func @transform_10(%arg0: i32) -> (i32, i32) {
    %c0_i32 = arith.constant 0 : i32
    %c0_i32_0 = arith.constant 0 : i32
    %c0_i32_1 = arith.constant 0 : i32
    return %c0_i32, %c0_i32_0 : i32, i32
  }
  func.func @transform_11(%arg0: i32) -> (i32, i32) {
    %c0_i32 = arith.constant 0 : i32
    %c0_i32_0 = arith.constant 0 : i32
    return %c0_i32, %arg0 : i32, i32
  }
}

</mosaic_0001>

<bundles_post_ra>
// kernel: pinn_forward.1
= control target key start
LH: loop header
LB: loop body
LE: loop exit
PB: predicated region body
PF: predicated region fallthrough
CT: control target
= control target key end

     0   :  { %s1495_s19 = smov 0   ;;  %s1779_s0 = inlined_call_operand.vmem [shape: f32[1,512], index: 0, kind: input, shape index: {}]   ;;  %s1780_s1 = inlined_call_operand.vmem [shape: f32[1,512], index: 1, kind: input, shape index: {}]   ;;  %s1781_s2 = inlined_call_operand.vmem [shape: f32[64,1], index: 2, kind: input, shape index: {}]   ;;  %s1782_s3 = inlined_call_operand.vmem [shape: f32[64,1], index: 3, kind: input, shape index: {}]   ;;  %s1783_s4 = inlined_call_operand.vmem [shape: f32[64,1], index: 4, kind: input, shape index: {}]   ;;  %s1784_s5 = inlined_call_operand.vmem [shape: f32[64,64], index: 5, kind: input, shape index: {}]   ;;  %s1785_s6 = inlined_call_operand.vmem [shape: f32[64,1], index: 6, kind: input, shape index: {}]   ;;  %s1786_s7 = inlined_call_operand.vmem [shape: f32[64,64], index: 7, kind: input, shape index: {}]   ;;  %s1787_s8 = inlined_call_operand.vmem [shape: f32[64,1], index: 8, kind: input, shape index: {}]   ;;  %s1788_s9 = inlined_call_operand.vmem [shape: f32[1,64], index: 9, kind: input, shape index: {}]   ;;  %s1789_s10 = inlined_call_operand.<no memory space> [shape: f32[1,1], index: 10, kind: input, shape index: {}]   ;;  %s1790_s11 = inlined_call_operand.vmem [shape: f32[1,512], index: 11, kind: output, shape index: {}]  }
   0x1   :  { %v16_v0 = vstv %s1789_s10 }
   0x2   :  { %17 = vst [vmem:[#allocation2] sm:$0x1] %v16_v0 }
   0x3 LB: > { %s1237_s20 = sadd.s32 4294967295, %s1427_s19   ;;  %p1241_p0 = scmp.ge.s32.totalorder %s1427_s19, 1  ;;  %s1427_s19 = sphi %s1495_s19, %s23_s19  }
   0x4   : > { %p349_p1 = scmp.lt.s32.totalorder %s1427_s19, 3 }
   0x6   : > { %p350_p2 = pnand %p1241_p0, %p349_p1 }
   0x7   : > { %v483_v1 = vld [vmem:[%s1782_s3] sm:$0xff] (!%p350_p2)  ;;  %v1429_v3 = vmov (!%p350_p2), 0   ;;  %v484_v4 = vld [vmem:[%s1782_s3 + $0x8] sm:$0xff] (!%p350_p2)  ;;  %v411_v6 = vld [vmem:[%s1781_s2 + $0x18] sm:$0xff] (!%p350_p2)  ;;  %v1430_v38 = vmov (!%p350_p2), 0.0   ;;  %s1242_s28 = sshll.u32 (!%p350_p2), %s1237_s20, 1  ;;  %v457_v44 = vlaneseq (!%p350_p2) }
   0x8   : > { %353 = sbr.rel (%p350_p2) target bundleno = 945 (0x3b1), region = 64  ;;  %v408_v2 = vld [vmem:[%s1781_s2] sm:$0xff] (!%p350_p2)  ;;  %1324 = vset.pattern.permute.xlu1 (!%p350_p2), %v1429_v3  ;;  %1323 = vset.pattern.permute.xlu0 (!%p350_p2), %v1429_v3  ;;  %v409_v5 = vld [vmem:[%s1781_s2 + $0x8] sm:$0xff] (!%p350_p2)  ;;  %v410_v7 = vld [vmem:[%s1781_s2 + $0x10] sm:$0xff] (!%p350_p2)  ;;  %p392_p3 = scmp.lt.s32.totalorder (!%p350_p2), %s1242_s28, 3  ;;  %vm710_vm0 = vcmask (!%p350_p2), 523264  }
   0x9   : > { %493 = vperm.xlu1 (!%p350_p2), %1324, %v483_v1   ;;  %418 = vperm.xlu0 (!%p350_p2), %1323, %v408_v2   ;;  %v486_v8 = vld [vmem:[%s1782_s3 + $0x18] sm:$0xff] (!%p350_p2)  ;;  %v485_v9 = vld [vmem:[%s1782_s3 + $0x10] sm:$0xff] (!%p350_p2)  ;;  %v575_v10 = vld [vmem:[%s1783_s4 + $0x8] sm:$0xff] (!%p350_p2)  ;;  %v1630_v45 = vshrl.u32 (!%p350_p2), %v457_v44, 7  ;;  %vm1178_vm1 = vcmp.lt.s32.totalorder (!%p350_p2), %v457_v44, 256 }
   0xa   : > { %v574_v11 = vld [vmem:[%s1783_s4] sm:$0xff] (!%p350_p2)  ;;  %v413_v12 = vld [vmem:[%s1781_s2 + $0x28] sm:$0xff] (!%p350_p2)  ;;  %v577_v16 = vld [vmem:[%s1783_s4 + $0x18] sm:$0xff] (!%p350_p2)  ;;  %799 = vmatprep.mubr.f32.mxu0 (!%p350_p2), %v1430_v38  ;;  %1008 = vmatprep.mubr.f32.mxu1 (!%p350_p2), %v1430_v38 }
   0xb   : > { %v412_v13 = vld [vmem:[%s1781_s2 + $0x20] sm:$0xff] (!%p350_p2)  ;;  %v488_v14 = vld [vmem:[%s1782_s3 + $0x28] sm:$0xff] (!%p350_p2)  ;;  %v576_v17 = vld [vmem:[%s1783_s4 + $0x10] sm:$0xff] (!%p350_p2)  ;;  %v1641_v48 = vsub.s32 (!%p350_p2), 0, %v1630_v45  ;;  %v463_v51 = vsub.s32 (!%p350_p2), 1, %v1630_v45 }
   0xc   : > { %v487_v15 = vld [vmem:[%s1782_s3 + $0x20] sm:$0xff] (!%p350_p2)  ;;  %v415_v18 = vld [vmem:[%s1781_s2 + $0x38] sm:$0xff] (!%p350_p2)  ;;  %v414_v19 = vld [vmem:[%s1781_s2 + $0x30] sm:$0xff] (!%p350_p2) }
   0xd   : > { %498 = vperm.xlu1 (!%p350_p2), %1324, %v484_v4   ;;  %423 = vperm.xlu0 (!%p350_p2), %1323, %v409_v5   ;;  %v490_v20 = vld [vmem:[%s1782_s3 + $0x38] sm:$0xff] (!%p350_p2)  ;;  %v489_v21 = vld [vmem:[%s1782_s3 + $0x30] sm:$0xff] (!%p350_p2)  ;;  %v579_v22 = vld [vmem:[%s1783_s4 + $0x28] sm:$0xff] (!%p350_p2) }
   0xe   : > { %v578_v23 = vld [vmem:[%s1783_s4 + $0x20] sm:$0xff] (!%p350_p2)  ;;  %v581_v24 = vld [vmem:[%s1783_s4 + $0x38] sm:$0xff] (!%p350_p2)  ;;  %v580_v25 = vld [vmem:[%s1783_s4 + $0x30] sm:$0xff] (!%p350_p2) }
   0xf   : > { %v663_v26 = vld [vmem:[%s1785_s6 + $0x8] sm:$0xff]  ;;  %v662_v27 = vld [vmem:[%s1785_s6] sm:$0xff]  ;;  %v665_v28 = vld [vmem:[%s1785_s6 + $0x18] sm:$0xff]  ;;  %s1792_s28 = smov (!%p392_p3, %s1242_s28), 3 }
  0x10   : > { %v664_v29 = vld [vmem:[%s1785_s6 + $0x10] sm:$0xff]  ;;  %v667_v30 = vld [vmem:[%s1785_s6 + $0x28] sm:$0xff]  ;;  %v666_v31 = vld [vmem:[%s1785_s6 + $0x20] sm:$0xff]  ;;  %s399_s12 = scalar_lea.vmem %s1780_s1, %s1792_s28  ;;  %s394_s15 = scalar_lea.vmem %s1779_s0, %s1792_s28 }
  0x11   : > { %433 = vperm.xlu1 %1324, %v411_v6   ;;  %428 = vperm.xlu0 %1323, %v410_v7   ;;  %v669_v32 = vld [vmem:[%s1785_s6 + $0x38] sm:$0xff]  ;;  %v668_v33 = vld [vmem:[%s1785_s6 + $0x30] sm:$0xff]  ;;  %v873_v34 = vld [vmem:[%s1787_s8 + $0x8] sm:$0xff]  ;;  %s404_s20 = scalar_lea.vmem %s1790_s11, %s1792_s28 }
  0x12   : > { %v872_v35 = vld [vmem:[%s1787_s8] sm:$0xff]  ;;  %v875_v36 = vld [vmem:[%s1787_s8 + $0x18] sm:$0xff]  ;;  %v874_v37 = vld [vmem:[%s1787_s8 + $0x10] sm:$0xff] }
  0x13   : > { %v877_v39 = vld [vmem:[%s1787_s8 + $0x28] sm:$0xff]  ;;  %v876_v40 = vld [vmem:[%s1787_s8 + $0x20] sm:$0xff]  ;;  %v879_v41 = vld [vmem:[%s1787_s8 + $0x38] sm:$0xff] }
  0x14   : > { %v878_v42 = vld [vmem:[%s1787_s8 + $0x30] sm:$0xff]  ;;  %v1074_v43 = vld [vmem:[#allocation2] sm:$0x1] }
  0x15   : > { %508 = vperm.xlu1 %1324, %v486_v8   ;;  %503 = vperm.xlu0 %1323, %v485_v9   ;;  %v407_v49 = vld [vmem:[%s399_s12] sm:$0x3] }
  0x16   : > { %v406_v50 = vld [vmem:[%s394_s15] sm:$0x3]  ;;  %v1645_v54 = vrot.slane %v407_v49, %v1641_v48  ;;  %v1650_v56 = vrot.slane %v407_v49, %v463_v51 }
  0x17   : > { %v1648_v55 = vrot.slane %v406_v50, %v1641_v48  ;;  %v1652_v57 = vrot.slane %v406_v50, %v463_v51 }
  0x19   : > { %589 = vperm.xlu1 %1324, %v575_v10   ;;  %584 = vperm.xlu0 %1323, %v574_v11  }
  0x1d   : > { %443 = vperm.xlu1 %1324, %v413_v12   ;;  %438 = vperm.xlu0 %1323, %v412_v13  }
  0x21   : > { %518 = vperm.xlu1 %1324, %v488_v14   ;;  %513 = vperm.xlu0 %1323, %v487_v15  }
  0x25   : > { %599 = vperm.xlu1 %1324, %v577_v16   ;;  %594 = vperm.xlu0 %1323, %v576_v17  }
  0x29   : > { %453 = vperm.xlu1 %1324, %v415_v18   ;;  %448 = vperm.xlu0 %1323, %v414_v19  }
  0x2d   : > { %528 = vperm.xlu1 %1324, %v490_v20   ;;  %523 = vperm.xlu0 %1323, %v489_v21  }
  0x31   : > { %609 = vperm.xlu1 %1324, %v579_v22   ;;  %604 = vperm.xlu0 %1323, %v578_v23  }
  0x35   : > { %619 = vperm.xlu1 %1324, %v581_v24   ;;  %614 = vperm.xlu0 %1323, %v580_v25  }
  0x39   : > { %677 = vperm.xlu1 %1324, %v663_v26   ;;  %672 = vperm.xlu0 %1323, %v662_v27  }
  0x3d   : > { %687 = vperm.xlu1 %1324, %v665_v28   ;;  %682 = vperm.xlu0 %1323, %v664_v29  }
  0x41   : > { %697 = vperm.xlu1 %1324, %v667_v30   ;;  %692 = vperm.xlu0 %1323, %v666_v31  }
  0x45   : > { %707 = vperm.xlu1 %1324, %v669_v32   ;;  %702 = vperm.xlu0 %1323, %v668_v33  }
  0x49   : > { %887 = vperm.xlu1 %1324, %v873_v34   ;;  %882 = vperm.xlu0 %1323, %v872_v35  }
  0x4d   : > { %897 = vperm.xlu1 %1324, %v875_v36   ;;  %892 = vperm.xlu0 %1323, %v874_v37  }
  0x51   : > { %907 = vperm.xlu1 %1324, %v877_v39   ;;  %902 = vperm.xlu0 %1323, %v876_v40  }
  0x55   : > { %917 = vperm.xlu1 %1324, %v879_v41   ;;  %912 = vperm.xlu0 %1323, %v878_v42  }
  0x59   : > { %1077 = vperm.xlu0 %1323, %v1074_v43  }
  0x88   : > { %v494_v46 = vpop.permute.xlu1 %493  ;;  %v419_v47 = vpop.permute.xlu0 %418 }
  0x89   : > { %v542_v60 = vmul.f32 %v1645_v54, %v494_v46  ;;  %v467_v61 = vmul.f32 %v1648_v55, %v419_v47  ;;  %v543_v2 = vmul.f32 %v1650_v56, %v494_v46  ;;  %v468_v3 = vmul.f32 %v1652_v57, %v419_v47 }
  0x8b   : > { %v558_v8 = vadd.f32 %v542_v60, %v467_v61  ;;  %v559_v11 = vadd.f32 %v543_v2, %v468_v3 }
  0x8c   : > { %v499_v52 = vpop.permute.xlu1 %498  ;;  %v424_v53 = vpop.permute.xlu0 %423 }
  0x8d   : > { %v544_v62 = vmul.f32 %v1645_v54, %v499_v52  ;;  %v545_v63 = vmul.f32 %v1650_v56, %v499_v52  ;;  %v469_v0 = vmul.f32 %v1648_v55, %v424_v53  ;;  %v470_v1 = vmul.f32 %v1652_v57, %v424_v53 }
  0x8f   : > { %v560_v6 = vadd.f32 %v544_v62, %v469_v0  ;;  %v561_v7 = vadd.f32 %v545_v63, %v470_v1 }
  0x90   : > { %v434_v58 = vpop.permute.xlu1 %433  ;;  %v429_v59 = vpop.permute.xlu0 %428 }
  0x91   : > { %v473_v24 = vmul.f32 %v1648_v55, %v434_v58  ;;  %v474_v25 = vmul.f32 %v1652_v57, %v434_v58  ;;  %v471_v26 = vmul.f32 %v1648_v55, %v429_v59  ;;  %v472_v27 = vmul.f32 %v1652_v57, %v429_v59 }
  0x94   : > { %v509_v4 = vpop.permute.xlu1 %508  ;;  %v504_v5 = vpop.permute.xlu0 %503 }
  0x95   : > { %v548_v18 = vmul.f32 %v1645_v54, %v509_v4  ;;  %v549_v19 = vmul.f32 %v1650_v56, %v509_v4  ;;  %v546_v20 = vmul.f32 %v1645_v54, %v504_v5  ;;  %v547_v21 = vmul.f32 %v1650_v56, %v504_v5 }
  0x97   : > { %v564_v28 = vadd.f32 %v548_v18, %v473_v24  ;;  %v565_v29 = vadd.f32 %v549_v19, %v474_v25  ;;  %v562_v30 = vadd.f32 %v546_v20, %v471_v26  ;;  %v563_v33 = vadd.f32 %v547_v21, %v472_v27 }
  0x98   : > { %v590_v9 = vpop.permute.xlu1 %589  ;;  %v585_v10 = vpop.permute.xlu0 %584 }
  0x99   : > { %v624_v12 = vadd.f32 %v590_v9, %v560_v6  ;;  %v625_v13 = vadd.f32 %v590_v9, %v561_v7  ;;  %v622_v14 = vadd.f32 %v585_v10, %v558_v8  ;;  %v623_v15 = vadd.f32 %v585_v10, %v559_v11 }
  0x9b   : > { %1325 = vtanh.f32 %v624_v12 }
  0x9c   : > { %1327 = vtanh.f32 %v625_v13  ;;  %v444_v16 = vpop.permute.xlu1 %443  ;;  %v439_v17 = vpop.permute.xlu0 %438 }
  0x9d   : > { %1329 = vtanh.f32 %v622_v14  ;;  %v477_v53 = vmul.f32 %v1648_v55, %v444_v16  ;;  %v478_v58 = vmul.f32 %v1652_v57, %v444_v16  ;;  %v475_v62 = vmul.f32 %v1648_v55, %v439_v17 }
  0x9e   : > { %1331 = vtanh.f32 %v623_v15  ;;  %v476_v63 = vmul.f32 %v1652_v57, %v439_v17 }
  0xa0   : > { %v519_v22 = vpop.permute.xlu1 %518  ;;  %v514_v23 = vpop.permute.xlu0 %513 }
  0xa1   : > { %v552_v49 = vmul.f32 %v1645_v54, %v519_v22  ;;  %v553_v50 = vmul.f32 %v1650_v56, %v519_v22  ;;  %v550_v52 = vmul.f32 %v1645_v54, %v514_v23  ;;  %v551_v59 = vmul.f32 %v1650_v56, %v514_v23 }
  0xa3   : > { %v568_v0 = vadd.f32 %v552_v49, %v477_v53  ;;  %v569_v1 = vadd.f32 %v553_v50, %v478_v58  ;;  %v566_v5 = vadd.f32 %v550_v52, %v475_v62  ;;  %v567_v11 = vadd.f32 %v551_v59, %v476_v63  ;;  %v657_v49 = vld [vmem:[%s1784_s5 + $0x18] sm:$0xff]  ;;  %v658_v50 = vld [vmem:[%s1784_s5 + $0x20] sm:$0xff]  ;;  %v660_v52 = vld [vmem:[%s1784_s5 + $0x30] sm:$0xff] }
  0xa4   : > { %v600_v31 = vpop.permute.xlu1 %599  ;;  %v595_v32 = vpop.permute.xlu0 %594  ;;  %v661_v53 = vld [vmem:[%s1784_s5 + $0x38] sm:$0xff] }
  0xa5   : > { %v1326_v34 = vpop.eup %1325  ;;  %v628_v35 = vadd.f32 %v600_v31, %v564_v28  ;;  %v629_v36 = vadd.f32 %v600_v31, %v565_v29  ;;  %v626_v37 = vadd.f32 %v595_v32, %v562_v30  ;;  %v627_v40 = vadd.f32 %v595_v32, %v563_v33 }
  0xa6   : > { %v1328_v39 = vpop.eup %1327 }
  0xa7   : > { %v1330_v41 = vpop.eup %1329  ;;  %1333 = vtanh.f32 %v628_v35 }
  0xa8   : > { %v1332_v42 = vpop.eup %1331  ;;  %1335 = vtanh.f32 %v629_v36  ;;  %v454_v43 = vpop.permute.xlu1 %453  ;;  %v1266_v47 = vpack.c.bf16 %v1326_v34, %v1330_v41 }
  0xa9   : > { %v449_v46 = vpop.permute.xlu0 %448  ;;  %1337 = vtanh.f32 %v626_v37  ;;  %v1264_v51 = vpack.c.bf16 %v1328_v39, %v1332_v42  ;;  %v481_v6 = vmul.f32 %v1648_v55, %v454_v43  ;;  %v482_v7 = vmul.f32 %v1652_v57, %v454_v43  ;;  %v654_v43 = vld [vmem:[%s1784_s5] sm:$0xff] }
  0xaa   : > { %1339 = vtanh.f32 %v627_v40  ;;  %v479_v13 = vmul.f32 %v1648_v55, %v449_v46  ;;  %v480_v18 = vmul.f32 %v1652_v57, %v449_v46  ;;  %v655_v46 = vld [vmem:[%s1784_s5 + $0x8] sm:$0xff] }
  0xab   : > { %1265 = vmatprep.subr.bf16.mxu0 %v1264_v51  ;;  %v659_v51 = vld [vmem:[%s1784_s5 + $0x28] sm:$0xff] }
  0xac   : > { %v529_v60 = vpop.permute.xlu1 %528  ;;  %1267 = vmatpush1.bf16.msra.mxu0 %v1266_v47  ;;  %v656_v47 = vld [vmem:[%s1784_s5 + $0x10] sm:$0xff] }
  0xad   : > { %v524_v61 = vpop.permute.xlu0 %523  ;;  %v556_v2 = vmul.f32 %v1645_v54, %v529_v60  ;;  %v557_v3 = vmul.f32 %v1650_v56, %v529_v60 }
  0xae   : > { %v554_v4 = vmul.f32 %v1645_v54, %v524_v61  ;;  %v555_v8 = vmul.f32 %v1650_v56, %v524_v61 }
  0xaf   : > { %v572_v20 = vadd.f32 %v556_v2, %v481_v6  ;;  %v573_v21 = vadd.f32 %v557_v3, %v482_v7 }
  0xb0   : > { %v610_v9 = vpop.permute.xlu1 %609  ;;  %v570_v22 = vadd.f32 %v554_v4, %v479_v13  ;;  %v571_v25 = vadd.f32 %v555_v8, %v480_v18 }
  0xb1   : > { %v605_v10 = vpop.permute.xlu0 %604  ;;  %v1334_v12 = vpop.eup %1333  ;;  %v632_v14 = vadd.f32 %v610_v9, %v568_v0  ;;  %v633_v15 = vadd.f32 %v610_v9, %v569_v1 }
  0xb2   : > { %v630_v16 = vadd.f32 %v605_v10, %v566_v5  ;;  %v1336_v17 = vpop.eup %1335  ;;  %v631_v54 = vadd.f32 %v605_v10, %v567_v11 }
  0xb3   : > { %v1338_v19 = vpop.eup %1337  ;;  %1341 = vtanh.f32 %v632_v14 }
  0xb4   : > { %v1340_v23 = vpop.eup %1339  ;;  %1343 = vtanh.f32 %v633_v15  ;;  %v620_v56 = vpop.permute.xlu1 %619  ;;  %v1270_v26 = vpack.c.bf16 %v1334_v12, %v1338_v19 }
  0xb5   : > { %v615_v24 = vpop.permute.xlu0 %614  ;;  %1345 = vtanh.f32 %v630_v16  ;;  %v636_v55 = vadd.f32 %v620_v56, %v572_v20  ;;  %v637_v27 = vadd.f32 %v620_v56, %v573_v21  ;;  %v1268_v30 = vpack.c.bf16 %v1336_v17, %v1340_v23 }
  0xb6   : > { %v634_v28 = vadd.f32 %v615_v24, %v570_v22  ;;  %1347 = vtanh.f32 %v631_v54  ;;  %v635_v29 = vadd.f32 %v615_v24, %v571_v25 }
  0xb7   : > { %1349 = vtanh.f32 %v636_v55  ;;  %1269 = vmatprep.subr.bf16.mxu0 %v1268_v30 }
  0xb8   : > { %1351 = vtanh.f32 %v637_v27  ;;  %1271 = vmatpush1.bf16.msra.mxu0 %v1270_v26  ;;  %v678_v63 = vpop.permute.xlu1 %677 }
  0xb9   : > { %1353 = vtanh.f32 %v634_v28  ;;  %v673_v58 = vpop.permute.xlu0 %672 }
  0xba   : > { %1355 = vtanh.f32 %v635_v29 }
  0xbc   : > { %v688_v9 = vpop.permute.xlu1 %687 }
  0xbd   : > { %v1342_v57 = vpop.eup %1341  ;;  %v683_v4 = vpop.permute.xlu0 %682 }
  0xbe   : > { %v1344_v31 = vpop.eup %1343 }
  0xbf   : > { %v1346_v32 = vpop.eup %1345 }
  0xc0   : > { %v1348_v33 = vpop.eup %1347  ;;  %v1274_v34 = vpack.c.bf16 %v1342_v57, %v1346_v32  ;;  %v698_v56 = vpop.permute.xlu1 %697 }
  0xc1   : > { %v1350_v35 = vpop.eup %1349  ;;  %v1272_v36 = vpack.c.bf16 %v1344_v31, %v1348_v33  ;;  %v693_v16 = vpop.permute.xlu0 %692 }
  0xc2   : > { %v1352_v37 = vpop.eup %1351 }
  0xc3   : > { %v1354_v39 = vpop.eup %1353  ;;  %1273 = vmatprep.subr.bf16.mxu0 %v1272_v36 }
  0xc4   : > { %v1356_v40 = vpop.eup %1355  ;;  %1275 = vmatpush1.bf16.msra.mxu0 %v1274_v34  ;;  %v1278_v41 = vpack.c.bf16 %v1350_v35, %v1354_v39 }
  0xc5   : > { %v1276_v42 = vpack.c.bf16 %v1352_v37, %v1356_v40  ;;  %v703_v29 = vpop.permute.xlu0 %702  ;;  %v708_v37 = vpop.permute.xlu1 %707 }
  0xc7   : > { %1277 = vmatprep.subr.bf16.mxu0 %v1276_v42 }
  0xc8   : > { %1279 = vmatpush1.bf16.msra.mxu0 %v1278_v41 }
  0xcb   : > { %1245 = vmatmul.mubr.msk.f32.vlgmr.msra.gmra.mrb[0].mxu0 %vm710_vm0, %v654_v43 }
  0xcc   : > { %805 = vmatprep.mubr.f32.mxu0 %v1430_v38 }
  0xcf   : > { %1246 = vmatmul.mubr.msk.f32.gmra.mrb[2].mxu0 %vm710_vm0, %v655_v46 }
  0xd0   : > { %811 = vmatprep.mubr.f32.mxu0 %v1430_v38 }
  0xd3   : > { %1247 = vmatmul.mubr.msk.f32.gmra.mrb[4].mxu0 %vm710_vm0, %v656_v47 }
  0xd4   : > { %817 = vmatprep.mubr.f32.mxu0 %v1430_v38 }
  0xd7   : > { %1248 = vmatmul.mubr.msk.f32.gmra.mrb[6].mxu0 %vm710_vm0, %v657_v49 }
  0xd8   : > { %823 = vmatprep.mubr.f32.mxu0 %v1430_v38 }
  0xdb   : > { %1249 = vmatmul.mubr.msk.f32.gmra.mrb[8].mxu0 %vm710_vm0, %v658_v50 }
  0xdc   : > { %829 = vmatprep.mubr.f32.mxu0 %v1430_v38 }
  0xdf   : > { %1250 = vmatmul.mubr.msk.f32.gmra.mrb[10].mxu0 %vm710_vm0, %v659_v51 }
  0xe0   : > { %835 = vmatprep.mubr.f32.mxu0 %v1430_v38 }
  0xe3   : > { %1251 = vmatmul.mubr.msk.f32.gmra.mrb[12].mxu0 %vm710_vm0, %v660_v52 }
  0xe4   : > { %841 = vmatprep.mubr.f32.mxu0 %v1430_v38 }
  0xe7   : > { %1252 = vmatmul.mubr.msk.f32.gmra.mrb[14].mxu0 %vm710_vm0, %v661_v53 }
  0xe8   : > { %1151 = vmatprep.mubr.f32.mxu0 %v1430_v38 }
 0x19e   : > { %v801_v59 = vpop.f32.mrb[0].mxu0 }
 0x19f   : > { %v802_v60 = vadd.f32 %v801_v59, %v673_v58  ;;  %v803_v61 = vpop.f32.mrb[1].mxu0 }
 0x1a0   : > { %v804_v62 = vadd.f32 %v803_v61, %v673_v58 }
 0x1a1   : > { %1357 = vtanh.f32 %v802_v60 }
 0x1a2   : > { %v807_v0 = vpop.f32.mrb[2].mxu0  ;;  %1359 = vtanh.f32 %v804_v62  ;;  %v864_v62 = vld [vmem:[%s1786_s7] sm:$0xff] }
 0x1a3   : > { %v808_v1 = vadd.f32 %v807_v0, %v678_v63  ;;  %v809_v2 = vpop.f32.mrb[3].mxu0  ;;  %v866_v0 = vld [vmem:[%s1786_s7 + $0x10] sm:$0xff] }
 0x1a4   : > { %v810_v3 = vadd.f32 %v809_v2, %v678_v63  ;;  %v865_v63 = vld [vmem:[%s1786_s7 + $0x8] sm:$0xff]  ;;  %v868_v2 = vld [vmem:[%s1786_s7 + $0x20] sm:$0xff] }
 0x1a5   : > { %1361 = vtanh.f32 %v808_v1  ;;  %v867_v1 = vld [vmem:[%s1786_s7 + $0x18] sm:$0xff] }
 0x1a6   : > { %1363 = vtanh.f32 %v810_v3  ;;  %v813_v5 = vpop.f32.mrb[4].mxu0  ;;  %v869_v3 = vld [vmem:[%s1786_s7 + $0x28] sm:$0xff] }
 0x1a7   : > { %v814_v6 = vadd.f32 %v813_v5, %v683_v4  ;;  %v815_v7 = vpop.f32.mrb[5].mxu0  ;;  %v871_v5 = vld [vmem:[%s1786_s7 + $0x38] sm:$0xff] }
 0x1a8   : > { %v816_v8 = vadd.f32 %v815_v7, %v683_v4  ;;  %v870_v4 = vld [vmem:[%s1786_s7 + $0x30] sm:$0xff] }
 0x1a9   : > { %1365 = vtanh.f32 %v814_v6  ;;  %v883_v6 = vpop.permute.xlu0 %882 }
 0x1aa   : > { %v819_v10 = vpop.f32.mrb[6].mxu0  ;;  %1367 = vtanh.f32 %v816_v8 }
 0x1ab   : > { %v820_v11 = vadd.f32 %v819_v10, %v688_v9  ;;  %v821_v12 = vpop.f32.mrb[7].mxu0  ;;  %v1358_v14 = vpop.eup %1357 }
 0x1ac   : > { %v822_v13 = vadd.f32 %v821_v12, %v688_v9  ;;  %v1360_v15 = vpop.eup %1359 }
 0x1ad   : > { %1369 = vtanh.f32 %v820_v11  ;;  %v888_v11 = vpop.permute.xlu1 %887 }
 0x1ae   : > { %1371 = vtanh.f32 %v822_v13  ;;  %v825_v17 = vpop.f32.mrb[8].mxu0 }
 0x1af   : > { %v1362_v18 = vpop.eup %1361  ;;  %v826_v54 = vadd.f32 %v825_v17, %v693_v16  ;;  %v827_v19 = vpop.f32.mrb[9].mxu0 }
 0x1b0   : > { %v1364_v20 = vpop.eup %1363  ;;  %v828_v21 = vadd.f32 %v827_v19, %v693_v16  ;;  %v1282_v22 = vpack.c.bf16 %v1362_v18, %v1358_v14 }
 0x1b1   : > { %v1280_v23 = vpack.c.bf16 %v1364_v20, %v1360_v15  ;;  %1373 = vtanh.f32 %v826_v54  ;;  %v898_v19 = vpop.permute.xlu1 %897 }
 0x1b2   : > { %v831_v24 = vpop.f32.mrb[10].mxu0  ;;  %1375 = vtanh.f32 %v828_v21 }
 0x1b3   : > { %v832_v25 = vadd.f32 %v831_v24, %v698_v56  ;;  %v833_v26 = vpop.f32.mrb[11].mxu0  ;;  %1281 = vmatprep.subr.bf16.mxu1 %v1280_v23  ;;  %v1366_v27 = vpop.eup %1365 }
 0x1b4   : > { %v834_v55 = vadd.f32 %v833_v26, %v698_v56  ;;  %1283 = vmatpush1.bf16.msra.mxu1 %v1282_v22  ;;  %v1368_v28 = vpop.eup %1367 }
 0x1b5   : > { %1377 = vtanh.f32 %v832_v25 }
 0x1b6   : > { %1379 = vtanh.f32 %v834_v55  ;;  %v837_v30 = vpop.f32.mrb[12].mxu0 }
 0x1b7   : > { %v1370_v57 = vpop.eup %1369  ;;  %v838_v31 = vadd.f32 %v837_v30, %v703_v29  ;;  %v839_v32 = vpop.f32.mrb[13].mxu0 }
 0x1b8   : > { %v1372_v33 = vpop.eup %1371  ;;  %v840_v34 = vadd.f32 %v839_v32, %v703_v29  ;;  %v1286_v35 = vpack.c.bf16 %v1370_v57, %v1366_v27  ;;  %v908_v32 = vpop.permute.xlu1 %907 }
 0x1b9   : > { %v1284_v36 = vpack.c.bf16 %v1372_v33, %v1368_v28  ;;  %1381 = vtanh.f32 %v838_v31 }
 0x1ba   : > { %v843_v39 = vpop.f32.mrb[14].mxu0  ;;  %1383 = vtanh.f32 %v840_v34 }
 0x1bb   : > { %v844_v40 = vadd.f32 %v843_v39, %v708_v37  ;;  %v845_v41 = vpop.f32.mrb[15].mxu0  ;;  %1285 = vmatprep.subr.bf16.mxu1 %v1284_v36  ;;  %v1374_v43 = vpop.eup %1373 }
 0x1bc   : > { %v846_v42 = vadd.f32 %v845_v41, %v708_v37  ;;  %1287 = vmatpush1.bf16.msra.mxu1 %v1286_v35  ;;  %v1376_v46 = vpop.eup %1375 }
 0x1bd   : > { %1385 = vtanh.f32 %v844_v40 }
 0x1be   : > { %1387 = vtanh.f32 %v846_v42 }
 0x1bf   : > { %v1378_v47 = vpop.eup %1377 }
 0x1c0   : > { %v1380_v49 = vpop.eup %1379  ;;  %v1290_v50 = vpack.c.bf16 %v1378_v47, %v1374_v43 }
 0x1c1   : > { %v1288_v51 = vpack.c.bf16 %v1380_v49, %v1376_v46 }
 0x1c3   : > { %1289 = vmatprep.subr.bf16.mxu1 %v1288_v51  ;;  %v1382_v52 = vpop.eup %1381 }
 0x1c4   : > { %1291 = vmatpush1.bf16.msra.mxu1 %v1290_v50  ;;  %v1384_v53 = vpop.eup %1383 }
 0x1c7   : > { %v1386_v58 = vpop.eup %1385 }
 0x1c8   : > { %v1388_v59 = vpop.eup %1387  ;;  %v1294_v60 = vpack.c.bf16 %v1386_v58, %v1382_v52  ;;  %v918_v52 = vpop.permute.xlu1 %917 }
 0x1c9   : > { %v1292_v61 = vpack.c.bf16 %v1388_v59, %v1384_v53 }
 0x1cb   : > { %1293 = vmatprep.subr.bf16.mxu1 %v1292_v61 }
 0x1cc   : > { %1295 = vmatpush1.bf16.msra.mxu1 %v1294_v60 }
 0x1cf   : > { %1253 = vmatmul.mubr.msk.f32.vlgmr.msra.gmra.mrb[0].mxu1 %vm710_vm0, %v864_v62 }
 0x1d0   : > { %1014 = vmatprep.mubr.f32.mxu1 %v1430_v38 }
 0x1d3   : > { %1254 = vmatmul.mubr.msk.f32.gmra.mrb[2].mxu1 %vm710_vm0, %v865_v63 }
 0x1d4   : > { %1020 = vmatprep.mubr.f32.mxu1 %v1430_v38 }
 0x1d7   : > { %1255 = vmatmul.mubr.msk.f32.gmra.mrb[4].mxu1 %vm710_vm0, %v866_v0 }
 0x1d8   : > { %1026 = vmatprep.mubr.f32.mxu1 %v1430_v38 }
 0x1db   : > { %1256 = vmatmul.mubr.msk.f32.gmra.mrb[6].mxu1 %vm710_vm0, %v867_v1 }
 0x1dc   : > { %1032 = vmatprep.mubr.f32.mxu1 %v1430_v38 }
 0x1df   : > { %1257 = vmatmul.mubr.msk.f32.gmra.mrb[8].mxu1 %vm710_vm0, %v868_v2 }
 0x1e0   : > { %1038 = vmatprep.mubr.f32.mxu1 %v1430_v38 }
 0x1e3   : > { %1258 = vmatmul.mubr.msk.f32.gmra.mrb[10].mxu1 %vm710_vm0, %v869_v3 }
 0x1e4   : > { %1044 = vmatprep.mubr.f32.mxu1 %v1430_v38 }
 0x1e7   : > { %1259 = vmatmul.mubr.msk.f32.gmra.mrb[12].mxu1 %vm710_vm0, %v870_v4 }
 0x1e8   : > { %1050 = vmatprep.mubr.f32.mxu1 %v1430_v38  ;;  %v893_v38 = vpop.permute.xlu0 %892 }
 0x1eb   : > { %1260 = vmatmul.mubr.msk.f32.gmra.mrb[14].mxu1 %vm710_vm0, %v871_v5 }
 0x1ec   : > { %v903_v25 = vpop.permute.xlu0 %902 }
 0x1f0   : > { %v913_v40 = vpop.permute.xlu0 %912 }
 0x2a2   : > { %v1010_v7 = vpop.f32.mrb[0].mxu1 }
 0x2a3   : > { %v1011_v8 = vadd.f32 %v1010_v7, %v883_v6  ;;  %v1012_v9 = vpop.f32.mrb[1].mxu1 }
 0x2a4   : > { %v1013_v10 = vadd.f32 %v1012_v9, %v883_v6  ;;  %v1073_v9 = vld [vmem:[%s1788_s9] sm:$0x1] }
 0x2a5   : > { %1389 = vtanh.f32 %v1011_v8 }
 0x2a6   : > { %v1016_v12 = vpop.f32.mrb[2].mxu1  ;;  %1391 = vtanh.f32 %v1013_v10  ;;  %v1431_v10 = vmov 1966171168  }
 0x2a7   : > { %v1017_v13 = vadd.f32 %v1016_v12, %v888_v11  ;;  %v1018_v14 = vpop.f32.mrb[3].mxu1  ;;  %v1078_v12 = vpop.permute.xlu0 %1077 }
 0x2a8   : > { %v1019_v15 = vadd.f32 %v1018_v14, %v888_v11  ;;  %v1162_v11 = vunpack.c.l.s4 %v1431_v10  ;;  %v1083_v14 = vrot.slane %v1078_v12, %v1641_v48 }
 0x2a9   : > { %1393 = vtanh.f32 %v1017_v13 }
 0x2aa   : > { %1395 = vtanh.f32 %v1019_v15  ;;  %v1022_v16 = vpop.f32.mrb[4].mxu1  ;;  %v1163_v13 = vunpack.c.0.s8 %v1162_v11 }
 0x2ab   : > { %v1023_v17 = vadd.f32 %v1022_v16, %v893_v38  ;;  %v1024_v18 = vpop.f32.mrb[5].mxu1 }
 0x2ac   : > { %v1025_v54 = vadd.f32 %v1024_v18, %v893_v38  ;;  %v1166_v18 = vsub.s32 %v1163_v13, %v1630_v45 }
 0x2ad   : > { %1397 = vtanh.f32 %v1023_v17 }
 0x2ae   : > { %v1028_v20 = vpop.f32.mrb[6].mxu1  ;;  %1399 = vtanh.f32 %v1025_v54 }
 0x2af   : > { %v1029_v21 = vadd.f32 %v1028_v20, %v898_v19  ;;  %v1030_v22 = vpop.f32.mrb[7].mxu1  ;;  %v1390_v56 = vpop.eup %1389 }
 0x2b0   : > { %v1031_v23 = vadd.f32 %v1030_v22, %v898_v19  ;;  %v1392_v24 = vpop.eup %1391 }
 0x2b1   : > { %1401 = vtanh.f32 %v1029_v21 }
 0x2b2   : > { %1403 = vtanh.f32 %v1031_v23  ;;  %v1034_v26 = vpop.f32.mrb[8].mxu1 }
 0x2b3   : > { %v1394_v55 = vpop.eup %1393  ;;  %v1035_v27 = vadd.f32 %v1034_v26, %v903_v25  ;;  %v1036_v28 = vpop.f32.mrb[9].mxu1 }
 0x2b4   : > { %v1396_v29 = vpop.eup %1395  ;;  %v1037_v30 = vadd.f32 %v1036_v28, %v903_v25  ;;  %v1298_v57 = vpack.c.bf16 %v1394_v55, %v1390_v56 }
 0x2b5   : > { %v1296_v31 = vpack.c.bf16 %v1396_v29, %v1392_v24  ;;  %1405 = vtanh.f32 %v1035_v27 }
 0x2b6   : > { %v1040_v33 = vpop.f32.mrb[10].mxu1  ;;  %1407 = vtanh.f32 %v1037_v30 }
 0x2b7   : > { %v1041_v34 = vadd.f32 %v1040_v33, %v908_v32  ;;  %v1042_v35 = vpop.f32.mrb[11].mxu1  ;;  %1297 = vmatprep.subr.bf16.mxu0 %v1296_v31  ;;  %v1398_v37 = vpop.eup %1397 }
 0x2b8   : > { %v1043_v36 = vadd.f32 %v1042_v35, %v908_v32  ;;  %1299 = vmatpush1.bf16.msra.mxu0 %v1298_v57  ;;  %v1400_v39 = vpop.eup %1399 }
 0x2b9   : > { %1409 = vtanh.f32 %v1041_v34 }
 0x2ba   : > { %1411 = vtanh.f32 %v1043_v36  ;;  %v1046_v41 = vpop.f32.mrb[12].mxu1 }
 0x2bb   : > { %v1402_v42 = vpop.eup %1401  ;;  %v1047_v43 = vadd.f32 %v1046_v41, %v913_v40  ;;  %v1048_v46 = vpop.f32.mrb[13].mxu1 }
 0x2bc   : > { %v1404_v47 = vpop.eup %1403  ;;  %v1049_v49 = vadd.f32 %v1048_v46, %v913_v40  ;;  %v1302_v50 = vpack.c.bf16 %v1402_v42, %v1398_v37 }
 0x2bd   : > { %v1300_v51 = vpack.c.bf16 %v1404_v47, %v1400_v39  ;;  %1413 = vtanh.f32 %v1047_v43 }
 0x2be   : > { %v1052_v53 = vpop.f32.mrb[14].mxu1  ;;  %1415 = vtanh.f32 %v1049_v49 }
 0x2bf   : > { %v1053_v58 = vadd.f32 %v1052_v53, %v918_v52  ;;  %v1054_v59 = vpop.f32.mrb[15].mxu1  ;;  %1301 = vmatprep.subr.bf16.mxu0 %v1300_v51  ;;  %v1406_v61 = vpop.eup %1405 }
 0x2c0   : > { %v1055_v60 = vadd.f32 %v1054_v59, %v918_v52  ;;  %1303 = vmatpush1.bf16.msra.mxu0 %v1302_v50  ;;  %v1408_v62 = vpop.eup %1407 }
 0x2c1   : > { %1417 = vtanh.f32 %v1053_v58 }
 0x2c2   : > { %1419 = vtanh.f32 %v1055_v60 }
 0x2c3   : > { %v1410_v63 = vpop.eup %1409 }
 0x2c4   : > { %v1412_v0 = vpop.eup %1411  ;;  %v1306_v1 = vpack.c.bf16 %v1410_v63, %v1406_v61 }
 0x2c5   : > { %v1304_v2 = vpack.c.bf16 %v1412_v0, %v1408_v62 }
 0x2c7   : > { %1305 = vmatprep.subr.bf16.mxu0 %v1304_v2  ;;  %v1414_v3 = vpop.eup %1413 }
 0x2c8   : > { %1307 = vmatpush1.bf16.msra.mxu0 %v1306_v1  ;;  %v1416_v4 = vpop.eup %1415 }
 0x2cb   : > { %v1418_v5 = vpop.eup %1417 }
 0x2cc   : > { %v1420_v6 = vpop.eup %1419  ;;  %v1310_v7 = vpack.c.bf16 %v1418_v5, %v1414_v3 }
 0x2cd   : > { %v1308_v8 = vpack.c.bf16 %v1420_v6, %v1416_v4 }
 0x2cf   : > { %1309 = vmatprep.subr.bf16.mxu0 %v1308_v8 }
 0x2d0   : > { %1311 = vmatpush1.bf16.msra.mxu0 %v1310_v7 }
 0x2d3   : > { %1261 = vmatmul.mubr.msk.f32.vlgmr.msra.gmra.mrb[16].mxu0 %vm710_vm0, %v1073_v9 }
 0x3a6   : > { %v1153_v15 = vpop.f32.mrb[16].mxu0 }
 0x3a7   : > { %v1154_v38 = vadd.f32 %v1153_v15, %v1083_v14  ;;  %v1155_v16 = vpop.f32.mrb[17].mxu0 }
 0x3a8   : > { %v1156_v17 = vadd.f32 %v1155_v16, %v1083_v14 }
 0x3aa   : > { %v1160_v54 = vcombine.low %v1154_v38, %v1156_v17 }
 0x3ac   : > { %v1167_v19 = vrot.slane %v1160_v54, %v1166_v18 }
 0x3ae   : > { %v1174_v20 = vrot.slane %v1167_v19, %v1166_v18 }
 0x3b0   : > { %1180 = vst.msk [vmem:[%s404_s20] sm:$0x3] %vm1178_vm1, %v1174_v20 }
 0x3b1 PF: > { %s23_s19 = sadd.s32 1, %s1427_s19  }
 0x3b2   : > { %p20_p4 = scmp.ge.s32.totalorder %s23_s19, 4  }
 0x3b4   :  { %22 = sbr.rel (!%p20_p4) target bundleno = 3 (0x3), region = 97 }

</bundles_post_ra>
